<compile_context>
chip_gen: v6e
topology: v6e:2x2x1
jax: 0.10.0
libtpu: 0.0.40
codegen_flags: <defaults>
</compile_context>

<pallas_src>
import functools

import jax
import jax.numpy as jnp
from jax import lax
from jax.experimental import pallas as pl
from jax.experimental.pallas import tpu as pltpu

LANE = 128  # TPU lane width; channel dims are zero-padded to this for lane-dense layout


# ----------------------------- helpers ------------------------------------ #

def _exact_gelu(x):
    # Matches torch.nn.functional.gelu default (exact erf form).
    return 0.5 * x * (1.0 + lax.erf(x * 0.7071067811865476))


def periodic_pad_1d(x, pad):
    """Periodic padding matching CNN.pad for dim=1 (channels-last, pad along axis 1)."""
    p = pad + 1
    left = x[:, -p:-1, :]    # x[L-p .. L-2]
    right = x[:, 1:p, :]     # x[1 .. p-1]
    return jnp.concatenate([left, x, right], axis=1)


# --------------------------- fused Pallas kernel ---------------------------- #

def _fused_cnn_kernel(*refs, B, L, K, num_layers):
    # refs = (x_pad, w_0, b_0, ..., w_{n-1}, b_{n-1}, out, pad_scratch)
    #   x_pad:       (B, L+2p, F_in)   input, periodically pre-padded along L (wrapper)
    #   w_0:         (K, F_in, LANE)   Linear folded into conv0; out-channels zero-padded
    #   w_i (i>=1):  (K, LANE, LANE)   zero-padded conv weights, tap-major on axis 0
    #   b_i:         (1, LANE)
    #   out:         (B, L, LANE)      lane-dense output slab (real channels in [:C_last])
    #   pad_scratch: (B, L+2p, LANE)   VMEM scratch holding the periodic wrap of h
    p = K // 2
    x_ref = refs[0]
    conv_refs = refs[1:1 + 2 * num_layers]
    o_ref = refs[1 + 2 * num_layers]
    pad_ref = refs[2 + 2 * num_layers]

    fin = x_ref.shape[-1]

    # ---- layer 0: Linear folded into conv0; x is already periodically padded ----
    w0_ref, b0_ref = conv_refs[0], conv_refs[1]
    h = jnp.zeros((B * L, LANE), jnp.float32)
    for t in range(K):                                        # K accumulating MXU dots
        tap = x_ref[:, t:t + L, :].reshape(B * L, fin)
        h = h + jnp.dot(tap, w0_ref[t], preferred_element_type=jnp.float32)
    h = h + b0_ref[...]
    if num_layers > 1:
        h = _exact_gelu(h)

    # ---- layers 1..n-1: padded-scratch wrap + K accumulating MXU dots ----
    for i in range(1, num_layers):
        w_ref, b_ref = conv_refs[2 * i], conv_refs[2 * i + 1]
        h3 = h.reshape(B, L, LANE)
        # Module's skip-endpoint periodic wrap, written once per layer:
        pad_ref[:, p:p + L, :] = h3
        if p > 0:
            pad_ref[:, 0:p, :] = h3[:, L - p - 1:L - 1, :]        # left  = h[L-p-1 .. L-2]
            pad_ref[:, p + L:p + L + p, :] = h3[:, 1:p + 1, :]    # right = h[1 .. p]
        acc = jnp.zeros((B * L, LANE), jnp.float32)
        for t in range(K):
            tap = pad_ref[:, t:t + L, :].reshape(B * L, LANE)
            acc = acc + jnp.dot(tap, w_ref[t], preferred_element_type=jnp.float32)
        acc = acc + b_ref[...]
        if i < num_layers - 1:
            acc = _exact_gelu(acc)
        h = acc

    o_ref[...] = h.reshape(B, L, LANE).astype(o_ref.dtype)


# ------------------------------ CNN forward -------------------------------- #

def cnn_forward(x, params, *, kernel_size):
    """x: (B, L, F_in) -> (B, L, layers[-1]). dim=1, downsample=False, dropout=0."""
    assert kernel_size % 2 == 1, "even kernel_size changes output length; only odd supported"
    B, L, Fin = x.shape
    K = kernel_size
    p = K // 2
    assert L >= p + 2, "sequence too short for the module's periodic wrap"

    proj_w = params["proj_w"].astype(jnp.float32)      # (F_in, C0)
    proj_b = params["proj_b"].astype(jnp.float32)      # (C0,)
    conv_ws = [w.astype(jnp.float32) for w in params["conv_w"]]   # (K, C_i, C_{i+1})
    conv_bs = [b.astype(jnp.float32) for b in params["conv_b"]]
    num_layers = len(conv_ws)
    assert num_layers >= 1
    C0 = proj_w.shape[1]
    C_last = conv_ws[-1].shape[2]
    assert max([C0, Fin] + [w.shape[2] for w in conv_ws]) <= LANE

    # Fold the input Linear into conv layer 0 (exact up to fp reassociation: the
    # periodic wrap commutes with a per-position linear map).
    w0 = conv_ws[0]                                     # (K, C0, C1)
    C1 = w0.shape[2]
    folded_w0 = jnp.einsum("fc,kcd->kfd", proj_w, w0)   # (K, F_in, C1)
    folded_b0 = proj_b @ jnp.sum(w0, axis=0) + conv_bs[0]   # (C1,)

    # Periodic pre-pad of x along L on the wrapper (tiny; fuses into the input copy).
    if p > 0:
        x_pad = jnp.concatenate(
            [x[:, L - p - 1:L - 1, :], x, x[:, 1:p + 1, :]], axis=1)   # (B, L+2p, F_in)
    else:
        x_pad = x

    # Zero-pad output-channel dims to LANE (weights/biases only; zero lanes stay
    # exactly zero through bias-add and GELU, so real channels are untouched).
    args = [x_pad.astype(jnp.float32)]
    args.append(jnp.zeros((K, Fin, LANE), jnp.float32).at[:, :, :C1].set(folded_w0))
    args.append(jnp.zeros((1, LANE), jnp.float32).at[:, :C1].set(folded_b0))
    for w, b in zip(conv_ws[1:], conv_bs[1:]):
        Kw, Ci, Co = w.shape
        args.append(jnp.zeros((Kw, LANE, LANE), jnp.float32).at[:, :Ci, :Co].set(w))
        args.append(jnp.zeros((1, LANE), jnp.float32).at[:, :Co].set(b))

    kernel = functools.partial(
        _fused_cnn_kernel, B=B, L=L, K=K, num_layers=num_layers)

    out = pl.pallas_call(
        kernel,
        out_shape=jax.ShapeDtypeStruct((B, L, LANE), x.dtype),
        in_specs=[pl.BlockSpec(memory_space=pltpu.MemorySpace.VMEM)] * len(args),
        out_specs=pl.BlockSpec(memory_space=pltpu.MemorySpace.VMEM),
        scratch_shapes=[pltpu.VMEM((B, L + 2 * p, LANE), jnp.float32)],
    )(*args)

    return out[:, :, :C_last]


# ------------------------------ reference ---------------------------------- #

def cnn_reference(x, params, *, kernel_size):
    B, L, Fin = x.shape
    h = x @ params["proj_w"] + params["proj_b"]
    num_layers = len(params["conv_w"])
    for i in range(num_layers):
        w, b = params["conv_w"][i], params["conv_b"][i]
        K = w.shape[0]
        xp = periodic_pad_1d(h, K // 2)
        out = jnp.zeros((B, L, w.shape[2]), jnp.float32)
        for t in range(K):
            out = out + jnp.einsum("blc,cd->bld", xp[:, t:t + L, :], w[t])
        out = out + b
        if i < num_layers - 1:
            out = _exact_gelu(out)
        h = out
    return h


# --------------------------------- main ------------------------------------ #

if __name__ == "__main__":
    # Module config: CNN(layers=[8, 16, 16], in_features=4, kernel_size=3, dim=1)
    layers = [8, 16, 16]
    in_features = 4
    kernel_size = 3
    B, L = 2, 16

    key = jax.random.PRNGKey(0)
    k_x, k_pw, k_pb, *k_conv = jax.random.split(key, 3 + 2 * (len(layers) - 1))

    x = jax.random.normal(k_x, (B, L, in_features), dtype=jnp.float32)

    params = {
        # nn.Linear(in_features, layers[0]) weight is (out, in) in torch; stored here as (in, out)
        "proj_w": jax.random.normal(k_pw, (in_features, layers[0]), jnp.float32) * 0.2,
        "proj_b": jax.random.normal(k_pb, (layers[0],), jnp.float32) * 0.1,
        "conv_w": [],
        "conv_b": [],
    }
    for i in range(len(layers) - 1):
        kw, kb = k_conv[2 * i], k_conv[2 * i + 1]
        # nn.Conv1d(layers[i], layers[i+1], k) weight is (Cout, Cin, K); stored here as (K, Cin, Cout)
        params["conv_w"].append(
            jax.random.normal(kw, (kernel_size, layers[i], layers[i + 1]), jnp.float32) * 0.1)
        params["conv_b"].append(
            jax.random.normal(kb, (layers[i + 1],), jnp.float32) * 0.1)

    fwd = jax.jit(functools.partial(cnn_forward, kernel_size=kernel_size))
    out = fwd(x, params)
    out = jax.block_until_ready(out)

    ref = cnn_reference(x, params, kernel_size=kernel_size)
    assert out.shape == (B, L, layers[-1]), out.shape
    assert jnp.allclose(out, ref, rtol=1e-4, atol=1e-4), float(jnp.max(jnp.abs(out - ref)))

    print("KERNEL_OK")
</pallas_src>

<mosaic_0001>
module attributes {stable_mosaic.version = 11 : i64} {
  func.func @_fused_cnn_kernel(%arg0: memref<2x18x4xf32, #tpu.memory_space<vmem>>, %arg1: memref<3x4x128xf32, #tpu.memory_space<vmem>>, %arg2: memref<1x128xf32, #tpu.memory_space<vmem>>, %arg3: memref<3x128x128xf32, #tpu.memory_space<vmem>>, %arg4: memref<1x128xf32, #tpu.memory_space<vmem>>, %arg5: memref<2x16x128xf32, #tpu.memory_space<vmem>>, %arg6: memref<2x18x128xf32, #tpu.memory_space<vmem>>) attributes {dimension_semantics = [], scalar_prefetch = 0 : i64, scratch_operands = 1 : i64, tpu.core_type = #tpu.core_type<tc>} {
    %cst = arith.constant 0.000000e+00 : f32
    %0 = vector.broadcast %cst : f32 to vector<32x128xf32>
    %c0 = arith.constant 0 : index
    %c0_0 = arith.constant 0 : index
    %c0_1 = arith.constant 0 : index
    %1 = vector.load %arg0[%c0, %c0_0, %c0_1] : memref<2x18x4xf32, #tpu.memory_space<vmem>>, vector<2x16x4xf32>
    %2 = vector.shape_cast %1 : vector<2x16x4xf32> to vector<32x4xf32>
    %c0_2 = arith.constant 0 : index
    %c0_3 = arith.constant 0 : index
    %c0_4 = arith.constant 0 : index
    %3 = vector.load %arg1[%c0_2, %c0_3, %c0_4] : memref<3x4x128xf32, #tpu.memory_space<vmem>>, vector<1x4x128xf32>
    %4 = vector.shape_cast %3 : vector<1x4x128xf32> to vector<4x128xf32>
    %cst_5 = arith.constant dense<0.000000e+00> : vector<32x128xf32>
    %5 = tpu.matmul %2, %4, %cst_5 {dimension_numbers = #tpu.dot_dimension_numbers<[1], [0], [0], [1], [0, 0, 1, 1], [], []>} : vector<32x4xf32>, vector<4x128xf32>, vector<32x128xf32> -> vector<32x128xf32>
    %6 = arith.addf %0, %5 : vector<32x128xf32>
    %c0_6 = arith.constant 0 : index
    %c1 = arith.constant 1 : index
    %c0_7 = arith.constant 0 : index
    %7 = vector.load %arg0[%c0_6, %c1, %c0_7] : memref<2x18x4xf32, #tpu.memory_space<vmem>>, vector<2x16x4xf32>
    %8 = vector.shape_cast %7 : vector<2x16x4xf32> to vector<32x4xf32>
    %c1_8 = arith.constant 1 : index
    %c0_9 = arith.constant 0 : index
    %c0_10 = arith.constant 0 : index
    %9 = vector.load %arg1[%c1_8, %c0_9, %c0_10] : memref<3x4x128xf32, #tpu.memory_space<vmem>>, vector<1x4x128xf32>
    %10 = vector.shape_cast %9 : vector<1x4x128xf32> to vector<4x128xf32>
    %cst_11 = arith.constant dense<0.000000e+00> : vector<32x128xf32>
    %11 = tpu.matmul %8, %10, %cst_11 {dimension_numbers = #tpu.dot_dimension_numbers<[1], [0], [0], [1], [0, 0, 1, 1], [], []>} : vector<32x4xf32>, vector<4x128xf32>, vector<32x128xf32> -> vector<32x128xf32>
    %12 = arith.addf %6, %11 : vector<32x128xf32>
    %c0_12 = arith.constant 0 : index
    %c2 = arith.constant 2 : index
    %c0_13 = arith.constant 0 : index
    %13 = vector.load %arg0[%c0_12, %c2, %c0_13] : memref<2x18x4xf32, #tpu.memory_space<vmem>>, vector<2x16x4xf32>
    %14 = vector.shape_cast %13 : vector<2x16x4xf32> to vector<32x4xf32>
    %c2_14 = arith.constant 2 : index
    %c0_15 = arith.constant 0 : index
    %c0_16 = arith.constant 0 : index
    %15 = vector.load %arg1[%c2_14, %c0_15, %c0_16] : memref<3x4x128xf32, #tpu.memory_space<vmem>>, vector<1x4x128xf32>
    %16 = vector.shape_cast %15 : vector<1x4x128xf32> to vector<4x128xf32>
    %cst_17 = arith.constant dense<0.000000e+00> : vector<32x128xf32>
    %17 = tpu.matmul %14, %16, %cst_17 {dimension_numbers = #tpu.dot_dimension_numbers<[1], [0], [0], [1], [0, 0, 1, 1], [], []>} : vector<32x4xf32>, vector<4x128xf32>, vector<32x128xf32> -> vector<32x128xf32>
    %18 = arith.addf %12, %17 : vector<32x128xf32>
    %c0_18 = arith.constant 0 : index
    %c0_19 = arith.constant 0 : index
    %19 = vector.load %arg2[%c0_18, %c0_19] : memref<1x128xf32, #tpu.memory_space<vmem>>, vector<1x128xf32>
    %20 = vector.broadcast %19 : vector<1x128xf32> to vector<32x128xf32>
    %21 = arith.addf %18, %20 : vector<32x128xf32>
    %cst_20 = arith.constant 5.000000e-01 : f32
    %22 = vector.broadcast %cst_20 : f32 to vector<32x128xf32>
    %23 = arith.mulf %22, %21 : vector<32x128xf32>
    %cst_21 = arith.constant 0.707106769 : f32
    %24 = vector.broadcast %cst_21 : f32 to vector<32x128xf32>
    %25 = arith.mulf %21, %24 : vector<32x128xf32>
    %26 = math.erf %25 : vector<32x128xf32>
    %cst_22 = arith.constant 1.000000e+00 : f32
    %27 = vector.broadcast %cst_22 : f32 to vector<32x128xf32>
    %28 = arith.addf %27, %26 : vector<32x128xf32>
    %29 = arith.mulf %23, %28 : vector<32x128xf32>
    %30 = vector.shape_cast %29 : vector<32x128xf32> to vector<2x16x128xf32>
    %c0_23 = arith.constant 0 : index
    %c1_24 = arith.constant 1 : index
    %c0_25 = arith.constant 0 : index
    %31 = vector.load %arg6[%c0_23, %c1_24, %c0_25] : memref<2x18x128xf32, #tpu.memory_space<vmem>>, vector<2x16x128xf32>
    tpu.vector_store %arg6[%c0_23, %c1_24, %c0_25], %30 {strides = array<i32>} : memref<2x18x128xf32, #tpu.memory_space<vmem>>, vector<2x16x128xf32>,
    %32 = vector.extract_strided_slice %30 {offsets = [0, 14, 0], sizes = [2, 1, 128], strides = [1, 1, 1]} : vector<2x16x128xf32> to vector<2x1x128xf32>
    %c0_26 = arith.constant 0 : index
    %c0_27 = arith.constant 0 : index
    %c0_28 = arith.constant 0 : index
    %33 = vector.load %arg6[%c0_26, %c0_27, %c0_28] : memref<2x18x128xf32, #tpu.memory_space<vmem>>, vector<2x1x128xf32>
    tpu.vector_store %arg6[%c0_26, %c0_27, %c0_28], %32 {strides = array<i32>} : memref<2x18x128xf32, #tpu.memory_space<vmem>>, vector<2x1x128xf32>,
    %34 = vector.extract_strided_slice %30 {offsets = [0, 1, 0], sizes = [2, 1, 128], strides = [1, 1, 1]} : vector<2x16x128xf32> to vector<2x1x128xf32>
    %c0_29 = arith.constant 0 : index
    %c17 = arith.constant 17 : index
    %c0_30 = arith.constant 0 : index
    %35 = vector.load %arg6[%c0_29, %c17, %c0_30] : memref<2x18x128xf32, #tpu.memory_space<vmem>>, vector<2x1x128xf32>
    tpu.vector_store %arg6[%c0_29, %c17, %c0_30], %34 {strides = array<i32>} : memref<2x18x128xf32, #tpu.memory_space<vmem>>, vector<2x1x128xf32>,
    %cst_31 = arith.constant 0.000000e+00 : f32
    %36 = vector.broadcast %cst_31 : f32 to vector<32x128xf32>
    %c0_32 = arith.constant 0 : index
    %c0_33 = arith.constant 0 : index
    %c0_34 = arith.constant 0 : index
    %37 = vector.load %arg6[%c0_32, %c0_33, %c0_34] : memref<2x18x128xf32, #tpu.memory_space<vmem>>, vector<2x16x128xf32>
    %38 = vector.shape_cast %37 : vector<2x16x128xf32> to vector<32x128xf32>
    %c0_35 = arith.constant 0 : index
    %c0_36 = arith.constant 0 : index
    %c0_37 = arith.constant 0 : index
    %39 = vector.load %arg3[%c0_35, %c0_36, %c0_37] : memref<3x128x128xf32, #tpu.memory_space<vmem>>, vector<1x128x128xf32>
    %40 = vector.shape_cast %39 : vector<1x128x128xf32> to vector<128x128xf32>
    %cst_38 = arith.constant dense<0.000000e+00> : vector<32x128xf32>
    %41 = tpu.matmul %38, %40, %cst_38 {dimension_numbers = #tpu.dot_dimension_numbers<[1], [0], [0], [1], [0, 0, 1, 1], [], []>} : vector<32x128xf32>, vector<128x128xf32>, vector<32x128xf32> -> vector<32x128xf32>
    %42 = arith.addf %36, %41 : vector<32x128xf32>
    %c0_39 = arith.constant 0 : index
    %c1_40 = arith.constant 1 : index
    %c0_41 = arith.constant 0 : index
    %43 = vector.load %arg6[%c0_39, %c1_40, %c0_41] : memref<2x18x128xf32, #tpu.memory_space<vmem>>, vector<2x16x128xf32>
    %44 = vector.shape_cast %43 : vector<2x16x128xf32> to vector<32x128xf32>
    %c1_42 = arith.constant 1 : index
    %c0_43 = arith.constant 0 : index
    %c0_44 = arith.constant 0 : index
    %45 = vector.load %arg3[%c1_42, %c0_43, %c0_44] : memref<3x128x128xf32, #tpu.memory_space<vmem>>, vector<1x128x128xf32>
    %46 = vector.shape_cast %45 : vector<1x128x128xf32> to vector<128x128xf32>
    %cst_45 = arith.constant dense<0.000000e+00> : vector<32x128xf32>
    %47 = tpu.matmul %44, %46, %cst_45 {dimension_numbers = #tpu.dot_dimension_numbers<[1], [0], [0], [1], [0, 0, 1, 1], [], []>} : vector<32x128xf32>, vector<128x128xf32>, vector<32x128xf32> -> vector<32x128xf32>
    %48 = arith.addf %42, %47 : vector<32x128xf32>
    %c0_46 = arith.constant 0 : index
    %c2_47 = arith.constant 2 : index
    %c0_48 = arith.constant 0 : index
    %49 = vector.load %arg6[%c0_46, %c2_47, %c0_48] : memref<2x18x128xf32, #tpu.memory_space<vmem>>, vector<2x16x128xf32>
    %50 = vector.shape_cast %49 : vector<2x16x128xf32> to vector<32x128xf32>
    %c2_49 = arith.constant 2 : index
    %c0_50 = arith.constant 0 : index
    %c0_51 = arith.constant 0 : index
    %51 = vector.load %arg3[%c2_49, %c0_50, %c0_51] : memref<3x128x128xf32, #tpu.memory_space<vmem>>, vector<1x128x128xf32>
    %52 = vector.shape_cast %51 : vector<1x128x128xf32> to vector<128x128xf32>
    %cst_52 = arith.constant dense<0.000000e+00> : vector<32x128xf32>
    %53 = tpu.matmul %50, %52, %cst_52 {dimension_numbers = #tpu.dot_dimension_numbers<[1], [0], [0], [1], [0, 0, 1, 1], [], []>} : vector<32x128xf32>, vector<128x128xf32>, vector<32x128xf32> -> vector<32x128xf32>
    %54 = arith.addf %48, %53 : vector<32x128xf32>
    %c0_53 = arith.constant 0 : index
    %c0_54 = arith.constant 0 : index
    %55 = vector.load %arg4[%c0_53, %c0_54] : memref<1x128xf32, #tpu.memory_space<vmem>>, vector<1x128xf32>
    %56 = vector.broadcast %55 : vector<1x128xf32> to vector<32x128xf32>
    %57 = arith.addf %54, %56 : vector<32x128xf32>
    %58 = vector.shape_cast %57 : vector<32x128xf32> to vector<2x16x128xf32>
    %c0_55 = arith.constant 0 : index
    %c0_56 = arith.constant 0 : index
    %c0_57 = arith.constant 0 : index
    %59 = vector.load %arg5[%c0_55, %c0_56, %c0_57] : memref<2x16x128xf32, #tpu.memory_space<vmem>>, vector<2x16x128xf32>
    tpu.vector_store %arg5[%c0_55, %c0_56, %c0_57], %58 {strides = array<i32>} : memref<2x16x128xf32, #tpu.memory_space<vmem>>, vector<2x16x128xf32>,
    return
  }
}

</mosaic_0001>

<bundles_post_ra>
// kernel: cnn_forward.1
= control target key start
LH: loop header
LB: loop body
LE: loop exit
PB: predicated region body
PF: predicated region fallthrough
CT: control target
= control target key end

     0   :  { %vm45_vm0 = vcmask 1043456   ;;  %vm32_vm1 = vcmask 31744   ;;  %s1285_s0 = inlined_call_operand.vmem [shape: f32[2,18,4], index: 0, kind: input, shape index: {}]   ;;  %s1286_s1 = inlined_call_operand.vmem [shape: f32[3,4,128], index: 1, kind: input, shape index: {}]   ;;  %s1287_s2 = inlined_call_operand.vmem [shape: f32[1,128], index: 2, kind: input, shape index: {}]   ;;  %s1288_s3 = inlined_call_operand.vmem [shape: f32[3,128,128], index: 3, kind: input, shape index: {}]   ;;  %s1289_s4 = inlined_call_operand.vmem [shape: f32[1,128], index: 4, kind: input, shape index: {}]   ;;  %s1290_s5 = inlined_call_operand.hbm [shape: f32[2,16,128], index: 5, kind: output, shape index: {}]  }
   0x1   :  { %v735_v0 = vld [vmem:[%s1286_s1 + $0x4] sm:$0xf]  ;;  %v27_v2 = vld [vmem:[%s1285_s0 + $0x9] sm:$0xff]  ;;  %v25_v3 = vld [vmem:[%s1286_s1] sm:$0xf] }
   0x2   :  { %v26_v1 = vld [vmem:[%s1285_s0 + $0x1] sm:$0xff]  ;;  %861 = vmatprep.subr.msk.mxu0 %vm45_vm0, %v735_v0  ;;  %v28_v4 = vld [vmem:[%s1285_s0 + $0x19] sm:$0xff] }
   0x3   :  { %863 = vmatprep.mubr.msk.f32.mxu0 %vm32_vm1, %v26_v1  ;;  %862 = vmatpush3.msk.msra.mxu0 %vm45_vm0, %v735_v0  ;;  %v746_v5 = vld [vmem:[%s1286_s1 + $0x8] sm:$0xf]  ;;  %v21_v7 = vld [vmem:[%s1285_s0] sm:$0xff] }
   0x4   :  { %864 = vmatmul.mubr.msk.f32.vlgmr.msra.gmra.mxu0 %vm32_vm1, %v27_v2  ;;  %869 = vmatprep.subr.msk.mxu0 %vm45_vm0, %v25_v3  ;;  %v29_v6 = vld [vmem:[%s1285_s0 + $0x21] sm:$0xff] }
   0x5   :  { %870 = vmatpush3.msk.msra.mxu0 %vm45_vm0, %v25_v3  ;;  %866 = vmatprep.mubr.msk.f32.mxu0 %vm32_vm1, %v28_v4 }
   0x6   :  { %877 = vmatprep.subr.msk.mxu0 %vm45_vm0, %v746_v5 }
   0x7   :  { %10 = vsyncpa [#allocation4], 0  ;;  %v22_v8 = vld [vmem:[%s1285_s0 + $0x8] sm:$0xff]  ;;  %v23_v9 = vld [vmem:[%s1285_s0 + $0x18] sm:$0xff]  ;;  %s1032_s11 = smov [#allocation3]  }
   0x8   :  { %867 = vmatmul.mubr.msk.f32.gmra.mxu0 %vm32_vm1, %v29_v6  ;;  %v24_v10 = vld [vmem:[%s1285_s0 + $0x20] sm:$0xff]  ;;  %v235_v12 = vld [vmem:[%s1285_s0 + $0xa] sm:$0xff]  ;;  %v768_v15 = vld [vmem:[%s1288_s3 + $0xf8] sm:$0xff]  ;;  %s724_s12 = sshll.u32 %s1032_s11, 4  ;;  %s725_s12 = int_to_ptr.vmem [resolvable:$true] %s724_s12 }
   0x9   :  { %871 = vmatprep.mubr.msk.f32.mxu0 %vm32_vm1, %v21_v7  ;;  %v234_v11 = vld [vmem:[%s1285_s0 + $0x2] sm:$0xff]  ;;  %v236_v13 = vld [vmem:[%s1285_s0 + $0x1a] sm:$0xff]  ;;  %885 = vmatprep.subr.mxu1 %v768_v15  ;;  %v767_v16 = vld [vmem:[%s1288_s3 + $0xf0] sm:$0xff]  ;;  %p1015_p1 = scmp.lt.s32.totalorder %s725_s12, %s725_s12 }
   0xa   :  { %v237_v14 = vld [vmem:[%s1285_s0 + $0x22] sm:$0xff]  ;;  %886 = vmatpush3.msra.mxu1 %v768_v15  ;;  %v402_v19 = vld [vmem:[%s1288_s3 + $0x78] sm:$0xff]  ;;  %v763_v21 = vld [vmem:[%s1288_s3 + $0xd0] sm:$0xff] }
   0xb   :  { %887 = vmatprep.subr.mxu1 %v767_v16  ;;  %v766_v17 = vld [vmem:[%s1288_s3 + $0xe8] sm:$0xff]  ;;  %v765_v18 = vld [vmem:[%s1288_s3 + $0xe0] sm:$0xff]  ;;  %v764_v20 = vld [vmem:[%s1288_s3 + $0xd8] sm:$0xff] }
   0xc   :  { %872 = vmatmul.mubr.msk.f32.vlgmr.msra.gmra.mxu0 %vm32_vm1, %v22_v8  ;;  %888 = vmatpush3.msra.mxu1 %v767_v16  ;;  %v401_v22 = vld [vmem:[%s1288_s3 + $0x70] sm:$0xff]  ;;  %v762_v23 = vld [vmem:[%s1288_s3 + $0xc8] sm:$0xff]  ;;  %v761_v25 = vld [vmem:[%s1288_s3 + $0xc0] sm:$0xff] }
   0xd   :  { %878 = vmatpush3.msk.msra.mxu0 %vm45_vm0, %v746_v5  ;;  %874 = vmatprep.mubr.msk.f32.mxu0 %vm32_vm1, %v23_v9  ;;  %v400_v24 = vld [vmem:[%s1288_s3 + $0x68] sm:$0xff]  ;;  %v399_v26 = vld [vmem:[%s1288_s3 + $0x60] sm:$0xff]  ;;  %v760_v27 = vld [vmem:[%s1288_s3 + $0xb8] sm:$0xff] }
   0xe   :  { %889 = vmatprep.subr.mxu1 %v766_v17  ;;  %923 = vmatprep.subr.mxu0 %v402_v19  ;;  %v398_v28 = vld [vmem:[%s1288_s3 + $0x58] sm:$0xff]  ;;  %v759_v29 = vld [vmem:[%s1288_s3 + $0xb0] sm:$0xff]  ;;  %v758_v31 = vld [vmem:[%s1288_s3 + $0xa8] sm:$0xff] }
   0xf   :  { %890 = vmatpush3.msra.mxu1 %v766_v17  ;;  %v397_v30 = vld [vmem:[%s1288_s3 + $0x50] sm:$0xff]  ;;  %v396_v32 = vld [vmem:[%s1288_s3 + $0x48] sm:$0xff]  ;;  %v757_v33 = vld [vmem:[%s1288_s3 + $0xa0] sm:$0xff] }
  0x10   :  { %875 = vmatmul.mubr.msk.f32.gmra.mxu0 %vm32_vm1, %v24_v10  ;;  %891 = vmatprep.subr.mxu1 %v765_v18  ;;  %v395_v34 = vld [vmem:[%s1288_s3 + $0x40] sm:$0xff]  ;;  %v756_v35 = vld [vmem:[%s1288_s3 + $0x98] sm:$0xff]  ;;  %v755_v37 = vld [vmem:[%s1288_s3 + $0x90] sm:$0xff] }
  0x11   :  { %879 = vmatprep.mubr.msk.f32.mxu0 %vm32_vm1, %v234_v11  ;;  %892 = vmatpush3.msra.mxu1 %v765_v18  ;;  %v394_v36 = vld [vmem:[%s1288_s3 + $0x38] sm:$0xff]  ;;  %v393_v38 = vld [vmem:[%s1288_s3 + $0x30] sm:$0xff]  ;;  %v754_v39 = vld [vmem:[%s1288_s3 + $0x88] sm:$0xff] }
  0x12   :  { %893 = vmatprep.subr.mxu1 %v764_v20  ;;  %v392_v40 = vld [vmem:[%s1288_s3 + $0x28] sm:$0xff]  ;;  %v753_v41 = vld [vmem:[%s1288_s3 + $0x80] sm:$0xff]  ;;  %v1215_v43 = vld [vmem:[%s1288_s3 + $0x178] sm:$0xff] }
  0x13   :  { %894 = vmatpush3.msra.mxu1 %v764_v20  ;;  %v391_v42 = vld [vmem:[%s1288_s3 + $0x20] sm:$0xff]  ;;  %v390_v44 = vld [vmem:[%s1288_s3 + $0x18] sm:$0xff]  ;;  %v389_v45 = vld [vmem:[%s1288_s3 + $0x10] sm:$0xff] }
  0x14   :  { %880 = vmatmul.mubr.msk.f32.vlgmr.msra.gmra.mxu0 %vm32_vm1, %v235_v12  ;;  %895 = vmatprep.subr.mxu1 %v763_v21  ;;  %v388_v46 = vld [vmem:[%s1288_s3 + $0x8] sm:$0xff]  ;;  %v387_v47 = vld [vmem:[%s1288_s3] sm:$0xff] }
  0x15   :  { %882 = vmatprep.mubr.msk.f32.mxu0 %vm32_vm1, %v236_v13  ;;  %924 = vmatpush3.msra.mxu0 %v402_v19  ;;  %v752_v58 = vld [vmem:[%s1287_s2] ss:$0 sm:$0xff] }
  0x16   :  { %925 = vmatprep.subr.mxu0 %v401_v22  ;;  %896 = vmatpush3.msra.mxu1 %v763_v21 }
  0x17   :  { %926 = vmatpush3.msra.mxu0 %v401_v22  ;;  %897 = vmatprep.subr.mxu1 %v762_v23 }
  0x18   :  { %883 = vmatmul.mubr.msk.f32.gmra.mxu0 %vm32_vm1, %v237_v14  ;;  %927 = vmatprep.subr.mxu0 %v400_v24 }
  0x19   :  { %898 = vmatpush3.msra.mxu1 %v762_v23  ;;  %928 = vmatpush3.msra.mxu0 %v400_v24 }
  0x1a   :  { %899 = vmatprep.subr.mxu1 %v761_v25  ;;  %929 = vmatprep.subr.mxu0 %v399_v26 }
  0x1b   :  { %900 = vmatpush3.msra.mxu1 %v761_v25  ;;  %930 = vmatpush3.msra.mxu0 %v399_v26  ;;  %v783_v26 = vld [vmem:[%s1288_s3 + $0x170] sm:$0xff] }
  0x1c   :  { %901 = vmatprep.subr.mxu1 %v760_v27  ;;  %931 = vmatprep.subr.mxu0 %v398_v28 }
  0x1d   :  { %902 = vmatpush3.msra.mxu1 %v760_v27  ;;  %932 = vmatpush3.msra.mxu0 %v398_v28 }
  0x1e   :  { %903 = vmatprep.subr.mxu1 %v759_v29  ;;  %933 = vmatprep.subr.mxu0 %v397_v30 }
  0x1f   :  { %904 = vmatpush3.msra.mxu1 %v759_v29  ;;  %934 = vmatpush3.msra.mxu0 %v397_v30  ;;  %v782_v29 = vld [vmem:[%s1288_s3 + $0x168] sm:$0xff] }
  0x20   :  { %905 = vmatprep.subr.mxu1 %v758_v31  ;;  %935 = vmatprep.subr.mxu0 %v396_v32 }
  0x21   :  { %906 = vmatpush3.msra.mxu1 %v758_v31  ;;  %936 = vmatpush3.msra.mxu0 %v396_v32  ;;  %v781_v31 = vld [vmem:[%s1288_s3 + $0x160] sm:$0xff] }
  0x22   :  { %907 = vmatprep.subr.mxu1 %v757_v33  ;;  %937 = vmatprep.subr.mxu0 %v395_v34 }
  0x23   :  { %908 = vmatpush3.msra.mxu1 %v757_v33  ;;  %938 = vmatpush3.msra.mxu0 %v395_v34 }
  0x24   :  { %909 = vmatprep.subr.mxu1 %v756_v35  ;;  %939 = vmatprep.subr.mxu0 %v394_v36 }
  0x25   :  { %910 = vmatpush3.msra.mxu1 %v756_v35  ;;  %940 = vmatpush3.msra.mxu0 %v394_v36  ;;  %v780_v35 = vld [vmem:[%s1288_s3 + $0x158] sm:$0xff]  ;;  %v779_v36 = vld [vmem:[%s1288_s3 + $0x150] sm:$0xff] }
  0x26   :  { %911 = vmatprep.subr.mxu1 %v755_v37  ;;  %941 = vmatprep.subr.mxu0 %v393_v38 }
  0x27   :  { %912 = vmatpush3.msra.mxu1 %v755_v37  ;;  %942 = vmatpush3.msra.mxu0 %v393_v38 }
  0x28   :  { %913 = vmatprep.subr.mxu1 %v754_v39  ;;  %943 = vmatprep.subr.mxu0 %v392_v40 }
  0x29   :  { %914 = vmatpush3.msra.mxu1 %v754_v39  ;;  %944 = vmatpush3.msra.mxu0 %v392_v40  ;;  %v778_v39 = vld [vmem:[%s1288_s3 + $0x148] sm:$0xff]  ;;  %v777_v40 = vld [vmem:[%s1288_s3 + $0x140] sm:$0xff] }
  0x2a   :  { %915 = vmatprep.subr.mxu1 %v753_v41  ;;  %945 = vmatprep.subr.mxu0 %v391_v42 }
  0x2b   :  { %916 = vmatpush3.msra.mxu1 %v753_v41  ;;  %946 = vmatpush3.msra.mxu0 %v391_v42  ;;  %v776_v41 = vld [vmem:[%s1288_s3 + $0x138] sm:$0xff]  ;;  %v775_v42 = vld [vmem:[%s1288_s3 + $0x130] sm:$0xff] }
  0x2c   :  { %961 = vmatprep.subr.mxu1 %v1215_v43  ;;  %947 = vmatprep.subr.mxu0 %v390_v44 }
  0x2d   :  { %948 = vmatpush3.msra.mxu0 %v390_v44  ;;  %v773_v44 = vld [vmem:[%s1288_s3 + $0x120] sm:$0xff] }
  0x2e   :  { %949 = vmatprep.subr.mxu0 %v389_v45 }
  0x2f   :  { %950 = vmatpush3.msra.mxu0 %v389_v45  ;;  %v772_v45 = vld [vmem:[%s1288_s3 + $0x118] sm:$0xff] }
  0x30   :  { %951 = vmatprep.subr.mxu0 %v388_v46 }
  0x31   :  { %952 = vmatpush3.msra.mxu0 %v388_v46  ;;  %v771_v46 = vld [vmem:[%s1288_s3 + $0x110] sm:$0xff] }
  0x32   :  { %953 = vmatprep.subr.mxu0 %v387_v47 }
  0x33   :  { %954 = vmatpush3.msra.mxu0 %v387_v47  ;;  %v770_v47 = vld [vmem:[%s1288_s3 + $0x108] sm:$0xff] }
  0xc4   :  { %v865_v48 = vpop.f32.mrf.mxu0 }
  0xc6   :  { %v115_v49 = vpop.f32.mrf.mxu0 }
  0xc8   :  { %v868_v50 = vpop.f32.mrf.mxu0 }
  0xca   :  { %v125_v51 = vpop.f32.mrf.mxu0 }
  0xcc   :  { %v873_v52 = vpop.f32.mrf.mxu0 }
  0xcd   :  { %v221_v56 = vadd.f32 %v873_v52, %v865_v48  ;;  %v769_v48 = vld [vmem:[%s1288_s3 + $0x100] sm:$0xff] }
  0xce   :  { %v215_v53 = vpop.f32.mrf.mxu0 }
  0xcf   :  { %v216_v59 = vadd.f32 %v215_v53, %v115_v49 }
  0xd0   :  { %v876_v54 = vpop.f32.mrf.mxu0 }
  0xd1   :  { %v231_v62 = vadd.f32 %v876_v54, %v868_v50 }
  0xd2   :  { %v225_v55 = vpop.f32.mrf.mxu0 }
  0xd3   :  { %v226_v5 = vadd.f32 %v225_v55, %v125_v51 }
  0xd4   :  { %v881_v57 = vpop.f32.mrf.mxu0 }
  0xd5   :  { %v341_v60 = vadd.f32 %v881_v57, %v221_v56 }
  0xd6   :  { %v321_v61 = vpop.f32.mrf.mxu0 }
  0xd7   :  { %v352_v63 = vadd.f32 %v752_v58, %v341_v60  ;;  %v340_v0 = vadd.f32 %v321_v61, %v216_v59  ;;  %v785_v61 = vld [vmem:[%s1289_s4] ss:$0 sm:$0xff]  ;;  %s1010_s4 = scalar_lea.vmem %s725_s12, 512 }
  0xd8   :  { %v884_v1 = vpop.f32.mrf.mxu0  ;;  %p1011_p0 = scmp.ne.s32.totalorder %s725_s12, %s1010_s4  ;;  %p1016_p2 = scmp.lt.s32.totalorder %s1010_s4, %s1010_s4 }
  0xd9   :  { %v360_v2 = vmul.f32 0.70710677, %v352_v63  ;;  %v351_v3 = vadd.f32 %v752_v58, %v340_v0  ;;  %v343_v4 = vadd.f32 %v884_v1, %v231_v62  ;;  %v356_v14 = vmul.f32 0.5, %v352_v63 }
  0xda   :  { %v331_v6 = vpop.f32.mrf.mxu0  ;;  %p1017_p3 = por %p1016_p2, %p1015_p1 }
  0xdb   :  { %1002 = verf.f32 %v360_v2  ;;  %v359_v7 = vmul.f32 0.70710677, %v351_v3  ;;  %v354_v8 = vadd.f32 %v752_v58, %v343_v4  ;;  %v342_v9 = vadd.f32 %v331_v6, %v226_v5 }
  0xdc   :  { %v355_v18 = vmul.f32 0.5, %v351_v3  ;;  %p1018_p4 = pnand %p1017_p3, %p1011_p0 }
  0xdd   :  { %1004 = verf.f32 %v359_v7  ;;  %v362_v10 = vmul.f32 0.70710677, %v354_v8  ;;  %v353_v11 = vadd.f32 %v752_v58, %v342_v9  ;;  %v358_v22 = vmul.f32 0.5, %v354_v8 }
  0xdf   :  { %1006 = verf.f32 %v362_v10  ;;  %v361_v12 = vmul.f32 0.70710677, %v353_v11  ;;  %v357_v27 = vmul.f32 0.5, %v353_v11 }
  0xe1   :  { %1008 = verf.f32 %v361_v12 }
  0xe8   :  { %v1003_v13 = vpop.eup %1002 }
  0xe9   :  { %v368_v15 = vadd.f32 1.0, %v1003_v13 }
  0xea   :  { %v1005_v16 = vpop.eup %1004 }
  0xeb   :  { %v372_v17 = vmul.f32 %v368_v15, %v356_v14  ;;  %v367_v19 = vadd.f32 1.0, %v1005_v16 }
  0xec   :  { %v1007_v20 = vpop.eup %1006 }
  0xed   :  { %376 = vst [vmem:[#allocation2 + $0x9] sm:$0xff] %v372_v17  ;;  %379 = vst [vmem:[#allocation2 - $0x6] sm:$0x40] %v372_v17  ;;  %v371_v21 = vmul.f32 %v367_v19, %v355_v18  ;;  %v370_v23 = vadd.f32 1.0, %v1007_v20 }
  0xee   :  { %v1009_v24 = vpop.eup %1008 }
  0xef   :  { %375 = vst [vmem:[#allocation2 + $0x1] sm:$0xff] %v371_v21  ;;  %381 = vst [vmem:[#allocation2 + $0x10] sm:$0x2] %v371_v21  ;;  %v374_v25 = vmul.f32 %v370_v23, %v358_v22  ;;  %917 = vmatprep.mubr.f32.mxu1 %v371_v21  ;;  %v369_v28 = vadd.f32 1.0, %v1009_v24 }
  0xf0   :  { %918 = vmatmul.mubr.f32.vlgmr.msra.gmra.mxu1 %v372_v17 }
  0xf1   :  { %378 = vst [vmem:[#allocation2 + $0x21] sm:$0xff] %v374_v25  ;;  %380 = vst [vmem:[#allocation2 + $0x12] sm:$0x40] %v374_v25  ;;  %962 = vmatpush3.msra.mxu1 %v1215_v43  ;;  %v373_v30 = vmul.f32 %v369_v28, %v357_v27  ;;  %v774_v43 = vld [vmem:[%s1288_s3 + $0x128] sm:$0xff] }
  0xf2   :  { %963 = vmatprep.subr.mxu1 %v783_v26 }
  0xf3   :  { %964 = vmatpush3.msra.mxu1 %v783_v26  ;;  %377 = vst [vmem:[#allocation2 + $0x19] sm:$0xff] %v373_v30  ;;  %382 = vst [vmem:[#allocation2 + $0x28] sm:$0x2] %v373_v30  ;;  %920 = vmatprep.mubr.f32.mxu1 %v373_v30 }
  0xf4   :  { %965 = vmatprep.subr.mxu1 %v782_v29  ;;  %921 = vmatmul.mubr.f32.gmra.mxu1 %v374_v25 }
  0xf5   :  { %966 = vmatpush3.msra.mxu1 %v782_v29 }
  0xf6   :  { %v383_v32 = vld [vmem:[#allocation2] sm:$0xff]  ;;  %v384_v33 = vld [vmem:[#allocation2 + $0x8] sm:$0xff]  ;;  %967 = vmatprep.subr.mxu1 %v781_v31 }
  0xf7   :  { %v594_v34 = vld [vmem:[#allocation2 + $0x2] sm:$0xff]  ;;  %955 = vmatprep.mubr.f32.mxu0 %v383_v32  ;;  %968 = vmatpush3.msra.mxu1 %v781_v31  ;;  %v595_v49 = vld [vmem:[#allocation2 + $0xa] sm:$0xff] }
  0xf8   :  { %956 = vmatmul.mubr.f32.vlgmr.msra.gmra.mxu0 %v384_v33  ;;  %993 = vmatprep.mubr.f32.mxu1 %v594_v34 }
  0xf9   :  { %969 = vmatprep.subr.mxu1 %v780_v35 }
  0xfa   :  { %v385_v37 = vld [vmem:[#allocation2 + $0x18] sm:$0xff]  ;;  %v386_v38 = vld [vmem:[#allocation2 + $0x20] sm:$0xff]  ;;  %970 = vmatpush3.msra.mxu1 %v780_v35 }
  0xfb   :  { %958 = vmatprep.mubr.f32.mxu0 %v385_v37  ;;  %971 = vmatprep.subr.mxu1 %v779_v36  ;;  %v596_v50 = vld [vmem:[#allocation2 + $0x1a] sm:$0xff]  ;;  %v597_v51 = vld [vmem:[#allocation2 + $0x22] sm:$0xff] }
  0xfc   :  { %959 = vmatmul.mubr.f32.gmra.mxu0 %v386_v38  ;;  %972 = vmatpush3.msra.mxu1 %v779_v36 }
  0xfd   :  { %973 = vmatprep.subr.mxu1 %v778_v39 }
  0xfe   :  { %974 = vmatpush3.msra.mxu1 %v778_v39 }
  0xff   :  { %975 = vmatprep.subr.mxu1 %v777_v40 }
 0x100   :  { %976 = vmatpush3.msra.mxu1 %v777_v40 }
 0x101   :  { %977 = vmatprep.subr.mxu1 %v776_v41 }
 0x102   :  { %978 = vmatpush3.msra.mxu1 %v776_v41 }
 0x103   :  { %979 = vmatprep.subr.mxu1 %v775_v42 }
 0x104   :  { %980 = vmatpush3.msra.mxu1 %v775_v42 }
 0x105   :  { %981 = vmatprep.subr.mxu1 %v774_v43 }
 0x106   :  { %982 = vmatpush3.msra.mxu1 %v774_v43 }
 0x107   :  { %983 = vmatprep.subr.mxu1 %v773_v44 }
 0x108   :  { %984 = vmatpush3.msra.mxu1 %v773_v44 }
 0x109   :  { %985 = vmatprep.subr.mxu1 %v772_v45 }
 0x10a   :  { %986 = vmatpush3.msra.mxu1 %v772_v45 }
 0x10b   :  { %987 = vmatprep.subr.mxu1 %v771_v46 }
 0x10c   :  { %988 = vmatpush3.msra.mxu1 %v771_v46 }
 0x10d   :  { %989 = vmatprep.subr.mxu1 %v770_v47 }
 0x10e   :  { %990 = vmatpush3.msra.mxu1 %v770_v47 }
 0x10f   :  { %991 = vmatprep.subr.mxu1 %v769_v48 }
 0x110   :  { %992 = vmatpush3.msra.mxu1 %v769_v48 }
 0x111   :  { %994 = vmatmul.mubr.f32.vlgmr.msra.gmra.mxu1 %v595_v49 }
 0x112   :  { %996 = vmatprep.mubr.f32.mxu1 %v596_v50 }
 0x115   :  { %997 = vmatmul.mubr.f32.gmra.mxu1 %v597_v51 }
 0x1b0   :  { %v919_v52 = vpop.f32.mrf.mxu1 }
 0x1b2   :  { %v490_v54 = vpop.f32.mrf.mxu1 }
 0x1b4   :  { %v922_v56 = vpop.f32.mrf.mxu1 }
 0x1b6   :  { %v500_v58 = vpop.f32.mrf.mxu1 }
 0x1b8   :  { %v957_v53 = vpop.f32.mrf.mxu0 }
 0x1b9   :  { %v581_v59 = vadd.f32 %v957_v53, %v919_v52 }
 0x1ba   :  { %v575_v55 = vpop.f32.mrf.mxu0 }
 0x1bb   :  { %v576_v62 = vadd.f32 %v575_v55, %v490_v54 }
 0x1bc   :  { %v960_v57 = vpop.f32.mrf.mxu0 }
 0x1bd   :  { %v591_v2 = vadd.f32 %v960_v57, %v922_v56 }
 0x1be   :  { %v585_v0 = vpop.f32.mrf.mxu0 }
 0x1bf   :  { %v586_v6 = vadd.f32 %v585_v0, %v500_v58 }
 0x1d1   :  { %v995_v60 = vpop.f32.mrf.mxu1 }
 0x1d2   :  { %v701_v63 = vadd.f32 %v995_v60, %v581_v59 }
 0x1d3   :  { %v681_v1 = vpop.f32.mrf.mxu1 }
 0x1d4   :  { %v712_v3 = vadd.f32 %v785_v61, %v701_v63  ;;  %v700_v4 = vadd.f32 %v681_v1, %v576_v62 }
 0x1d5   :  { %v998_v5 = vpop.f32.mrf.mxu1 }
 0x1d6   :  { %716 = vst [vmem:[#allocation3 + $0x8] sm:$0xff] %v712_v3  ;;  %v711_v7 = vadd.f32 %v785_v61, %v700_v4  ;;  %v703_v8 = vadd.f32 %v998_v5, %v591_v2 }
 0x1d7   :  { %v691_v9 = vpop.f32.mrf.mxu1 }
 0x1d8   :  { %715 = vst [vmem:[#allocation3] sm:$0xff] %v711_v7  ;;  %v714_v10 = vadd.f32 %v785_v61, %v703_v8  ;;  %v702_v11 = vadd.f32 %v691_v9, %v586_v6 }
 0x1da   :  { %718 = vst [vmem:[#allocation3 + $0x18] sm:$0xff] %v714_v10  ;;  %v713_v12 = vadd.f32 %v785_v61, %v702_v11 }
 0x1dc   :  { %717 = vst [vmem:[#allocation3 + $0x10] sm:$0xff] %v713_v12 }
 0x1dd   :  { %1021 = shalt.err (!%p1018_p4)
}
 0x1de   :  { %s1033_s13 = smov 128   ;;  %s1034_s14 = smov 8  }
 0x1df   :  { %730 = dma.vmem_to_hbm [thread:$0]  %s725_s12, 512, %s1290_s5, [#allocation4], %s1033_s13, %s1033_s13, %s1034_s14  }
 0x1e0   :  { %1030 = dma.done.wait [#allocation4], 512  }
 0x1e1   :  { %1031 = vsyncadd [#allocation4], 4294966784 }
 0x1e2   :  { %734 = vsyncpa [#allocation4], 1 }

</bundles_post_ra>
